<compile_context>
chip_gen: v7x
topology: tpu7x:2x2x1
jax: 0.10.0
libtpu: 0.0.40
codegen_flags: <defaults>
</compile_context>

<pallas_src>
import jax
import jax.numpy as jnp
from jax.experimental import pallas as pl
from jax.experimental.pallas import tpu as pltpu


def _round_up(x, m):
    return (x + m - 1) // m * m


# ----------------------------- Pallas kernel ------------------------------ #
def _mlp_mask_kernel(x_ref, w1_ref, b1_ref, w2_ref, b2_ref, mask_ref, y_ref):
    # x: (TB, 6E) f32   w1: (6E, H)   b1: (1, H)   w2: (1, H) row
    # b2: (1, 1) f32 in SMEM          mask: (1, TB) int32       y: (1, TB) f32
    h = jnp.dot(x_ref[...], w1_ref[...], preferred_element_type=jnp.float32)
    h = jnp.maximum(h + b1_ref[...], 0.0)                         # ReLU (TB, H)
    # Second layer (H -> 1): VPU multiply + lane reduction, keeps the MXU free
    # for the next tile's first matmul instead of pushing an N=1 tile through.
    y = jnp.sum(h * w2_ref[...], axis=-1) + b2_ref[0, 0]          # (TB,)
    y = jnp.where(mask_ref[0, :] == -1, -100.0, y)                # invalid nbr
    y_ref[0, :] = y                                               # lane-dense


def confidence_mlp(x, w1, b1, w2, b2, nbr_left, *, max_tile_b=1024):
    B, F = x.shape
    H = w1.shape[1]
    tile_b = min(max_tile_b, _round_up(B, 128))
    b_pad = _round_up(B, tile_b)
    n_tiles = b_pad // tile_b
    if b_pad != B:
        x = jnp.pad(x, ((0, b_pad - B), (0, 0)))
        nbr_left = jnp.pad(nbr_left, (0, b_pad - B))
    mask = nbr_left.astype(jnp.int32).reshape(n_tiles, tile_b)

    vmem = pltpu.MemorySpace.VMEM
    out = pl.pallas_call(
        _mlp_mask_kernel,
        out_shape=jax.ShapeDtypeStruct((n_tiles, tile_b), jnp.float32),
        grid=(n_tiles,),
        in_specs=[
            pl.BlockSpec((tile_b, F), lambda i: (i, 0), memory_space=vmem),  # x
            pl.BlockSpec((F, H), lambda i: (0, 0), memory_space=vmem),       # w1
            pl.BlockSpec((1, H), lambda i: (0, 0), memory_space=vmem),       # b1
            pl.BlockSpec((1, H), lambda i: (0, 0), memory_space=vmem),       # w2
            pl.BlockSpec(memory_space=pltpu.MemorySpace.SMEM),               # b2
            pl.BlockSpec((1, tile_b), lambda i: (i, 0), memory_space=vmem),  # mask
        ],
        out_specs=pl.BlockSpec((1, tile_b), lambda i: (i, 0), memory_space=vmem),
        compiler_params=pltpu.CompilerParams(
            dimension_semantics=("parallel",)),
    )(x, w1, b1.reshape(1, H), w2.reshape(1, H), b2.reshape(1, 1), mask)

    return out.reshape(b_pad)[:B].reshape(B, 1)


# ------------------------------ JAX glue ---------------------------------- #
def model_forward(params, mapping_arr, source, dest, nbr):
    emb = params["embeddings"]                              # (num_nodes, E)

    def edge_to_nodes(edge_ids):
        safe = jnp.maximum(edge_ids, 0)
        valid = edge_ids >= 0
        left = jnp.where(valid, mapping_arr[safe, 0], -1)
        right = jnp.where(valid, mapping_arr[safe, 1], -1)
        return left, right

    s_l, s_r = edge_to_nodes(source)
    d_l, d_r = edge_to_nodes(dest)
    n_l, n_r = edge_to_nodes(nbr)

    def gvec(ids):
        # node_id == -1  ->  zero row (same as the prepended-zero-row trick)
        v = emb[jnp.maximum(ids, 0)]
        return jnp.where((ids >= 0)[:, None], v, 0.0)

    # x = concat(source_vec, nbr_vec, dest_vec), each pair = (left, right)
    x = jnp.concatenate(
        [gvec(s_l), gvec(s_r), gvec(n_l), gvec(n_r), gvec(d_l), gvec(d_r)],
        axis=1)                                             # (B, 6E)

    return confidence_mlp(x, params["w1"], params["b1"],
                          params["w2"], params["b2"], n_l)


# --------------------------- Parameter setup ------------------------------ #
def init_params(key, num_nodes, embedding_size, hidden_dim):
    k1, k2, k3, k4, k5 = jax.random.split(key, 5)
    input_size = 6 * embedding_size
    return {
        "embeddings": jax.random.normal(k1, (num_nodes, embedding_size),
                                        dtype=jnp.float32),
        "w1": jax.random.normal(k2, (input_size, hidden_dim),
                                dtype=jnp.float32) * 0.05,
        "b1": jax.random.normal(k3, (hidden_dim,), dtype=jnp.float32) * 0.01,
        "w2": jax.random.normal(k4, (hidden_dim, 1), dtype=jnp.float32) * 0.05,
        "b2": jax.random.normal(k5, (1,), dtype=jnp.float32) * 0.01,
    }


if __name__ == "__main__":
    key = jax.random.PRNGKey(0)

    num_nodes = 16
    num_edges = 12
    embedding_size = 32
    hidden_dim = 32
    batch = 8

    pkey, mkey, skey, dkey, nkey = jax.random.split(key, 5)
    params = init_params(pkey, num_nodes, embedding_size, hidden_dim)

    # deterministic edge -> (left node, right node) mapping
    mapping_arr = jax.random.randint(mkey, (num_edges, 2), 0, num_nodes,
                                     dtype=jnp.int32)

    source = jax.random.randint(skey, (batch,), 0, num_edges, dtype=jnp.int32)
    dest = jax.random.randint(dkey, (batch,), 0, num_edges, dtype=jnp.int32)
    nbr = jax.random.randint(nkey, (batch,), 0, num_edges, dtype=jnp.int32)
    # make a couple of nbr entries invalid (-1) to exercise the -100 mask path
    nbr = nbr.at[1].set(-1).at[5].set(-1)

    y = jax.jit(model_forward)(params, mapping_arr, source, dest, nbr)
    y = jax.block_until_ready(y)

    assert y.shape == (batch, 1)
    assert bool(jnp.all(y[jnp.array([1, 5])] == -100.0))
    print("KERNEL_OK")
</pallas_src>

<mosaic_0001>
module attributes {stable_mosaic.version = 11 : i64} {
  func.func @_mlp_mask_kernel(%arg0: i32, %arg1: memref<128x192xf32, #tpu.memory_space<vmem>>, %arg2: memref<192x32xf32, #tpu.memory_space<vmem>>, %arg3: memref<1x32xf32, #tpu.memory_space<vmem>>, %arg4: memref<1x32xf32, #tpu.memory_space<vmem>>, %arg5: memref<1x1xf32, #tpu.memory_space<smem>>, %arg6: memref<1x128xi32, #tpu.memory_space<vmem>>, %arg7: memref<1x128xf32, #tpu.memory_space<vmem>>) attributes {dimension_semantics = [#tpu.dimension_semantics<parallel>], iteration_bounds = array<i64: 1>, scalar_prefetch = 0 : i64, scratch_operands = 0 : i64, tpu.core_type = #tpu.core_type<tc>, window_params = [{transform_indices = @transform_0, window_bounds = array<i64: 128, 192>}, {pipeline_mode = #tpu.pipeline_mode<synchronous>, transform_indices = @transform_1, window_bounds = array<i64: 192, 32>}, {pipeline_mode = #tpu.pipeline_mode<synchronous>, transform_indices = @transform_2, window_bounds = array<i64: 1, 32>}, {pipeline_mode = #tpu.pipeline_mode<synchronous>, transform_indices = @transform_3, window_bounds = array<i64: 1, 32>}, {transform_indices = @transform_4, window_bounds = array<i64: 1, 1>}, {transform_indices = @transform_5, window_bounds = array<i64: 1, 128>}, {transform_indices = @transform_6, window_bounds = array<i64: 1, 128>}]} {
    %c0 = arith.constant 0 : index
    %c0_0 = arith.constant 0 : index
    %0 = vector.load %arg1[%c0, %c0_0] : memref<128x192xf32, #tpu.memory_space<vmem>>, vector<128x192xf32>
    %c0_1 = arith.constant 0 : index
    %c0_2 = arith.constant 0 : index
    %1 = vector.load %arg2[%c0_1, %c0_2] : memref<192x32xf32, #tpu.memory_space<vmem>>, vector<192x32xf32>
    %cst = arith.constant dense<0.000000e+00> : vector<128x32xf32>
    %2 = tpu.matmul %0, %1, %cst {dimension_numbers = #tpu.dot_dimension_numbers<[1], [0], [0], [1], [0, 0, 1, 1], [], []>} : vector<128x192xf32>, vector<192x32xf32>, vector<128x32xf32> -> vector<128x32xf32>
    %c0_3 = arith.constant 0 : index
    %c0_4 = arith.constant 0 : index
    %3 = vector.load %arg3[%c0_3, %c0_4] : memref<1x32xf32, #tpu.memory_space<vmem>>, vector<1x32xf32>
    %4 = vector.broadcast %3 : vector<1x32xf32> to vector<128x32xf32>
    %5 = arith.addf %2, %4 : vector<128x32xf32>
    %cst_5 = arith.constant 0.000000e+00 : f32
    %6 = vector.broadcast %cst_5 : f32 to vector<128x32xf32>
    %7 = arith.maximumf %5, %6 : vector<128x32xf32>
    %c0_6 = arith.constant 0 : index
    %c0_7 = arith.constant 0 : index
    %8 = vector.load %arg4[%c0_6, %c0_7] : memref<1x32xf32, #tpu.memory_space<vmem>>, vector<1x32xf32>
    %9 = vector.broadcast %8 : vector<1x32xf32> to vector<128x32xf32>
    %10 = arith.mulf %7, %9 : vector<128x32xf32>
    %cst_8 = arith.constant dense<0.000000e+00> : vector<128xf32>
    %11 = vector.multi_reduction <add>, %10, %cst_8 [1] : vector<128x32xf32> to vector<128xf32>
    %c0_9 = arith.constant 0 : index
    %c0_10 = arith.constant 0 : index
    %12 = memref.load %arg5[%c0_9, %c0_10] : memref<1x1xf32, #tpu.memory_space<smem>>
    %13 = vector.broadcast %12 : f32 to vector<128xf32>
    %14 = arith.addf %11, %13 : vector<128xf32>
    %c0_11 = arith.constant 0 : index
    %c0_12 = arith.constant 0 : index
    %15 = vector.load %arg6[%c0_11, %c0_12] : memref<1x128xi32, #tpu.memory_space<vmem>>, vector<1x128xi32>
    %16 = vector.shape_cast %15 : vector<1x128xi32> to vector<128xi32>
    %c-1_i32 = arith.constant -1 : i32
    %17 = vector.broadcast %c-1_i32 : i32 to vector<128xi32>
    %18 = arith.cmpi eq, %16, %17 : vector<128xi32>
    %cst_13 = arith.constant -1.000000e+02 : f32
    %19 = vector.broadcast %cst_13 : f32 to vector<128xf32>
    %20 = arith.select %18, %19, %14 : vector<128xi1>, vector<128xf32>
    %c0_14 = arith.constant 0 : index
    %c0_15 = arith.constant 0 : index
    %21 = vector.load %arg7[%c0_14, %c0_15] : memref<1x128xf32, #tpu.memory_space<vmem>>, vector<1x128xf32>
    %22 = vector.shape_cast %21 : vector<1x128xf32> to vector<128xf32>
    %23 = vector.shape_cast %20 : vector<128xf32> to vector<1x128xf32>
    tpu.vector_store %arg7[%c0_14, %c0_15], %23 {strides = array<i32>} : memref<1x128xf32, #tpu.memory_space<vmem>>, vector<1x128xf32>,
    return
  }
  func.func @transform_0(%arg0: i32) -> (i32, i32) {
    %c0_i32 = arith.constant 0 : i32
    %c0_i32_0 = arith.constant 0 : i32
    return %arg0, %c0_i32 : i32, i32
  }
  func.func @transform_1(%arg0: i32) -> (i32, i32) {
    %c0_i32 = arith.constant 0 : i32
    %c0_i32_0 = arith.constant 0 : i32
    %c0_i32_1 = arith.constant 0 : i32
    return %c0_i32, %c0_i32_0 : i32, i32
  }
  func.func @transform_2(%arg0: i32) -> (i32, i32) {
    %c0_i32 = arith.constant 0 : i32
    %c0_i32_0 = arith.constant 0 : i32
    %c0_i32_1 = arith.constant 0 : i32
    return %c0_i32, %c0_i32_0 : i32, i32
  }
  func.func @transform_3(%arg0: i32) -> (i32, i32) {
    %c0_i32 = arith.constant 0 : i32
    %c0_i32_0 = arith.constant 0 : i32
    %c0_i32_1 = arith.constant 0 : i32
    return %c0_i32, %c0_i32_0 : i32, i32
  }
  func.func @transform_4(%arg0: i32) -> (i32, i32) {
    %c0_i32 = arith.constant 0 : i32
    %c0_i32_0 = arith.constant 0 : i32
    %c0_i32_1 = arith.constant 0 : i32
    return %c0_i32, %c0_i32_0 : i32, i32
  }
  func.func @transform_5(%arg0: i32) -> (i32, i32) {
    %c0_i32 = arith.constant 0 : i32
    %c0_i32_0 = arith.constant 0 : i32
    return %arg0, %c0_i32 : i32, i32
  }
  func.func @transform_6(%arg0: i32) -> (i32, i32) {
    %c0_i32 = arith.constant 0 : i32
    %c0_i32_0 = arith.constant 0 : i32
    return %arg0, %c0_i32 : i32, i32
  }
}

</mosaic_0001>

<bundles_post_ra>
// kernel: model_forward.1
= control target key start
LH: loop header
LB: loop body
LE: loop exit
PB: predicated region body
PF: predicated region fallthrough
CT: control target
= control target key end

     0   :  { %v1964_v0 = vmov 0.0|0.0   ;;  %vm87_vm0 = vcmask 523264   ;;  %vm320_vm1 = vcmask 261120   ;;  %vm1760_vm2 = vcmask 130112   ;;  %s2722_s1 = inlined_call_operand.vmem [shape: f32[192,32], index: 1, kind: input, shape index: {}]   ;;  %s2723_s0 = inlined_call_operand.vmem [shape: f32[128,192], index: 0, kind: input, shape index: {}]   ;;  %s2724_s2 = inlined_call_operand.vmem [shape: f32[1,32], index: 2, kind: input, shape index: {}]   ;;  %s2725_s3 = inlined_call_operand.vmem [shape: f32[1,32], index: 3, kind: input, shape index: {}]   ;;  %s2726_s4 = inlined_call_operand.<no memory space> [shape: f32[1,1], index: 4, kind: input, shape index: {}]   ;;  %s2727_s5 = inlined_call_operand.vmem [shape: s32[1,128], index: 5, kind: input, shape index: {}]   ;;  %s2728_s6 = inlined_call_operand.vmem [shape: f32[1,128], index: 6, kind: output, shape index: {}]  }
   0x1   :  { %1899 = vmatprep.subr.bf16.mxu0 %v1964_v0  ;;  %v56_v1 = vld [vmem:[%s2722_s1] sm:$0xff]  ;;  %v57_v2 = vld [vmem:[%s2722_s1 + $0x8] sm:$0xff]  ;;  %1935 = vmatprep.subr.bf16.mxu1 %v1964_v0  ;;  %v58_v3 = vld [vmem:[%s2722_s1 + $0x10] sm:$0xff]  ;;  %vm1767_vm3 = vcmask 195712   ;;  %vm1774_vm4 = vcmask 261312   ;;  %vm1781_vm5 = vcmask 326912  }
   0x2   :  { %v1900_v4 = vpack.c.bf16 %v57_v2, %v56_v1  ;;  %v59_v5 = vld [vmem:[%s2722_s1 + $0x18] sm:$0xff]  ;;  %v60_v7 = vld [vmem:[%s2722_s1 + $0x20] sm:$0xff]  ;;  %v61_v8 = vld [vmem:[%s2722_s1 + $0x28] sm:$0xff]  ;;  %vm1788_vm6 = vcmask 392512   ;;  %vm1795_vm7 = vcmask 458112   ;;  %vm1802_vm8 = vcmask 523712  }
   0x3   :  { %v1903_v6 = vpack.c.bf16 %v59_v5, %v58_v3  ;;  %v1906_v9 = vpack.c.bf16 %v61_v8, %v60_v7  ;;  %v62_v10 = vld [vmem:[%s2722_s1 + $0x30] sm:$0xff]  ;;  %v63_v11 = vld [vmem:[%s2722_s1 + $0x38] sm:$0xff]  ;;  %v25_v12 = vld [vmem:[%s2723_s0 + $0x8] sm:$0xff]  ;;  %vm1809_vm9 = vcmask 589312   ;;  %vm1816_vm10 = vcmask 654912  }
   0x4   :  { %1901 = vmatpush1.bf16.msra.mxu0 %v1900_v4  ;;  %1947 = vmatpush1.bf16.msra.mxu1 %v1900_v4  ;;  %v41_v13 = vld [vmem:[%s2723_s0 + $0x88] sm:$0xff]  ;;  %v1909_v14 = vpack.c.bf16 %v63_v11, %v62_v10  ;;  %v64_v15 = vld [vmem:[%s2722_s1 + $0x40] sm:$0xff]  ;;  %v66_v18 = vld [vmem:[%s2722_s1 + $0x50] sm:$0xff]  ;;  %vm1823_vm11 = vcmask 720512   ;;  %vm1830_vm12 = vcmask 786112   ;;  %vm1837_vm13 = vcmask 851712  }
   0x5   :  { %1902 = vmatprep.subr.bf16.mxu0 %v1964_v0  ;;  %1936 = vmatprep.subr.bf16.mxu1 %v1964_v0  ;;  %v65_v16 = vld [vmem:[%s2722_s1 + $0x48] sm:$0xff]  ;;  %v67_v19 = vld [vmem:[%s2722_s1 + $0x58] sm:$0xff]  ;;  %v68_v21 = vld [vmem:[%s2722_s1 + $0x60] sm:$0xff]  ;;  %vm1844_vm14 = vcmask 917312   ;;  %vm1851_vm15 = vcmask 982912  }
   0x6   :  { %1882 = vmatprep.mubr.msk.f32.mxu0 %vm87_vm0, %v25_v12  ;;  %1890 = vmatprep.mubr.msk.f32.mxu1 %vm87_vm0, %v41_v13  ;;  %v1912_v17 = vpack.c.bf16 %v65_v16, %v64_v15  ;;  %v1915_v20 = vpack.c.bf16 %v67_v19, %v66_v18  ;;  %v69_v22 = vld [vmem:[%s2722_s1 + $0x68] sm:$0xff]  ;;  %v70_v24 = vld [vmem:[%s2722_s1 + $0x70] sm:$0xff]  ;;  %v71_v25 = vld [vmem:[%s2722_s1 + $0x78] sm:$0xff] }
   0x7   :  { %v1918_v23 = vpack.c.bf16 %v69_v22, %v68_v21  ;;  %v1921_v26 = vpack.c.bf16 %v71_v25, %v70_v24  ;;  %v72_v27 = vld [vmem:[%s2722_s1 + $0x80] sm:$0xff]  ;;  %v73_v28 = vld [vmem:[%s2722_s1 + $0x88] sm:$0xff]  ;;  %v74_v30 = vld [vmem:[%s2722_s1 + $0x90] sm:$0xff] }
   0x8   :  { %1904 = vmatpush1.bf16.msra.mxu0 %v1903_v6  ;;  %1948 = vmatpush1.bf16.msra.mxu1 %v1903_v6  ;;  %v1924_v29 = vpack.c.bf16 %v73_v28, %v72_v27  ;;  %v75_v31 = vld [vmem:[%s2722_s1 + $0x98] sm:$0xff]  ;;  %v76_v33 = vld [vmem:[%s2722_s1 + $0xa0] sm:$0xff]  ;;  %v77_v34 = vld [vmem:[%s2722_s1 + $0xa8] sm:$0xff] }
   0x9   :  { %1905 = vmatprep.subr.bf16.mxu0 %v1964_v0  ;;  %1937 = vmatprep.subr.bf16.mxu1 %v1964_v0  ;;  %v1927_v32 = vpack.c.bf16 %v75_v31, %v74_v30  ;;  %v1930_v35 = vpack.c.bf16 %v77_v34, %v76_v33  ;;  %v78_v36 = vld [vmem:[%s2722_s1 + $0xb0] sm:$0xff]  ;;  %v79_v37 = vld [vmem:[%s2722_s1 + $0xb8] sm:$0xff]  ;;  %v24_v39 = vld [vmem:[%s2723_s0] sm:$0xff] }
   0xa   :  { %v1933_v38 = vpack.c.bf16 %v79_v37, %v78_v36  ;;  %v40_v40 = vld [vmem:[%s2723_s0 + $0x80] sm:$0xff]  ;;  %v27_v41 = vld [vmem:[%s2723_s0 + $0x18] sm:$0xff]  ;;  %v26_v43 = vld [vmem:[%s2723_s0 + $0x10] sm:$0xff] }
   0xb   :  { %v43_v42 = vld [vmem:[%s2723_s0 + $0x98] sm:$0xff]  ;;  %v42_v44 = vld [vmem:[%s2723_s0 + $0x90] sm:$0xff]  ;;  %v29_v45 = vld [vmem:[%s2723_s0 + $0x28] sm:$0xff] }
   0xc   :  { %1907 = vmatpush1.bf16.msra.mxu0 %v1906_v9  ;;  %1949 = vmatpush1.bf16.msra.mxu1 %v1906_v9  ;;  %v45_v46 = vld [vmem:[%s2723_s0 + $0xa8] sm:$0xff]  ;;  %v28_v47 = vld [vmem:[%s2723_s0 + $0x20] sm:$0xff]  ;;  %v31_v49 = vld [vmem:[%s2723_s0 + $0x38] sm:$0xff] }
   0xd   :  { %1908 = vmatprep.subr.bf16.mxu0 %v1964_v0  ;;  %1938 = vmatprep.subr.bf16.mxu1 %v1964_v0  ;;  %v44_v48 = vld [vmem:[%s2723_s0 + $0xa0] sm:$0xff]  ;;  %v47_v50 = vld [vmem:[%s2723_s0 + $0xb8] sm:$0xff]  ;;  %v30_v51 = vld [vmem:[%s2723_s0 + $0x30] sm:$0xff] }
   0xe   :  { %v46_v52 = vld [vmem:[%s2723_s0 + $0xb0] sm:$0xff]  ;;  %v33_v53 = vld [vmem:[%s2723_s0 + $0x48] sm:$0xff]  ;;  %v32_v55 = vld [vmem:[%s2723_s0 + $0x40] sm:$0xff] }
   0xf   :  { %v49_v54 = vld [vmem:[%s2723_s0 + $0xc8] sm:$0xff]  ;;  %v48_v56 = vld [vmem:[%s2723_s0 + $0xc0] sm:$0xff]  ;;  %v35_v57 = vld [vmem:[%s2723_s0 + $0x58] sm:$0xff] }
  0x10   :  { %1910 = vmatpush1.bf16.msra.mxu0 %v1909_v14  ;;  %1950 = vmatpush1.bf16.msra.mxu1 %v1909_v14  ;;  %v51_v58 = vld [vmem:[%s2723_s0 + $0xd8] sm:$0xff]  ;;  %v34_v59 = vld [vmem:[%s2723_s0 + $0x50] sm:$0xff]  ;;  %v37_v61 = vld [vmem:[%s2723_s0 + $0x68] sm:$0xff] }
  0x11   :  { %1911 = vmatprep.subr.bf16.mxu0 %v1964_v0  ;;  %1939 = vmatprep.subr.bf16.mxu1 %v1964_v0  ;;  %v50_v60 = vld [vmem:[%s2723_s0 + $0xd0] sm:$0xff]  ;;  %v53_v62 = vld [vmem:[%s2723_s0 + $0xe8] sm:$0xff]  ;;  %v36_v63 = vld [vmem:[%s2723_s0 + $0x60] sm:$0xff] }
  0x12   :  { %v39_v1 = vld [vmem:[%s2723_s0 + $0x78] sm:$0xff]  ;;  %v38_v3 = vld [vmem:[%s2723_s0 + $0x70] sm:$0xff]  ;;  %v2213_v5 = vld [vmem:[%s2724_s2] ss:$0 sm:$0xff] }
  0x13   :  { %v55_v2 = vld [vmem:[%s2723_s0 + $0xf8] sm:$0xff]  ;;  %v54_v4 = vld [vmem:[%s2723_s0 + $0xf0] sm:$0xff]  ;;  %v2220_v12 = vld [vmem:[%s2725_s3] ss:$0 sm:$0xff] }
  0x14   :  { %1913 = vmatpush1.bf16.msra.mxu0 %v1912_v17  ;;  %1951 = vmatpush1.bf16.msra.mxu1 %v1912_v17 }
  0x15   :  { %1914 = vmatprep.subr.bf16.mxu0 %v1964_v0  ;;  %1940 = vmatprep.subr.bf16.mxu1 %v1964_v0 }
  0x18   :  { %1916 = vmatpush1.bf16.msra.mxu0 %v1915_v20  ;;  %1952 = vmatpush1.bf16.msra.mxu1 %v1915_v20 }
  0x19   :  { %1917 = vmatprep.subr.bf16.mxu0 %v1964_v0  ;;  %1941 = vmatprep.subr.bf16.mxu1 %v1964_v0 }
  0x1c   :  { %1919 = vmatpush1.bf16.msra.mxu0 %v1918_v23  ;;  %1953 = vmatpush1.bf16.msra.mxu1 %v1918_v23 }
  0x1d   :  { %1920 = vmatprep.subr.bf16.mxu0 %v1964_v0  ;;  %1942 = vmatprep.subr.bf16.mxu1 %v1964_v0 }
  0x20   :  { %1922 = vmatpush1.bf16.msra.mxu0 %v1921_v26  ;;  %1954 = vmatpush1.bf16.msra.mxu1 %v1921_v26 }
  0x21   :  { %1923 = vmatprep.subr.bf16.mxu0 %v1964_v0  ;;  %1943 = vmatprep.subr.bf16.mxu1 %v1964_v0 }
  0x24   :  { %1925 = vmatpush1.bf16.msra.mxu0 %v1924_v29  ;;  %1955 = vmatpush1.bf16.msra.mxu1 %v1924_v29 }
  0x25   :  { %1926 = vmatprep.subr.bf16.mxu0 %v1964_v0  ;;  %1944 = vmatprep.subr.bf16.mxu1 %v1964_v0 }
  0x28   :  { %1928 = vmatpush1.bf16.msra.mxu0 %v1927_v32  ;;  %1956 = vmatpush1.bf16.msra.mxu1 %v1927_v32 }
  0x29   :  { %1929 = vmatprep.subr.bf16.mxu0 %v1964_v0  ;;  %1945 = vmatprep.subr.bf16.mxu1 %v1964_v0 }
  0x2c   :  { %1931 = vmatpush1.bf16.msra.mxu0 %v1930_v35  ;;  %1957 = vmatpush1.bf16.msra.mxu1 %v1930_v35 }
  0x2d   :  { %1932 = vmatprep.subr.bf16.mxu0 %v1964_v0  ;;  %1946 = vmatprep.subr.bf16.mxu1 %v1964_v0  ;;  %v52_v0 = vld [vmem:[%s2723_s0 + $0xe0] sm:$0xff] }
  0x30   :  { %1934 = vmatpush1.bf16.msra.mxu0 %v1933_v38  ;;  %1958 = vmatpush1.bf16.msra.mxu1 %v1933_v38 }
  0x33   :  { %201 = vmatmul.mubr.f32.vlgmr.msra.gmra.mrb[0].mxu0 %v24_v39  ;;  %241 = vmatmul.mubr.f32.vlgmr.msra.gmra.mrb[0].mxu1 %v40_v40 }
  0x34   :  { %1883 = vmatprep.mubr.msk.f32.mxu0 %vm87_vm0, %v27_v41  ;;  %1891 = vmatprep.mubr.msk.f32.mxu1 %vm87_vm0, %v43_v42 }
  0x37   :  { %206 = vmatmul.mubr.f32.gmra.mrb[2].mxu0 %v26_v43  ;;  %246 = vmatmul.mubr.f32.gmra.mrb[2].mxu1 %v42_v44 }
  0x38   :  { %1884 = vmatprep.mubr.msk.f32.mxu0 %vm87_vm0, %v29_v45  ;;  %1892 = vmatprep.mubr.msk.f32.mxu1 %vm87_vm0, %v45_v46 }
  0x3b   :  { %211 = vmatmul.mubr.f32.gmra.mrb[4].mxu0 %v28_v47  ;;  %251 = vmatmul.mubr.f32.gmra.mrb[4].mxu1 %v44_v48 }
  0x3c   :  { %1885 = vmatprep.mubr.msk.f32.mxu0 %vm87_vm0, %v31_v49  ;;  %1893 = vmatprep.mubr.msk.f32.mxu1 %vm87_vm0, %v47_v50 }
  0x3f   :  { %216 = vmatmul.mubr.f32.gmra.mrb[6].mxu0 %v30_v51  ;;  %256 = vmatmul.mubr.f32.gmra.mrb[6].mxu1 %v46_v52 }
  0x40   :  { %1886 = vmatprep.mubr.msk.f32.mxu0 %vm87_vm0, %v33_v53  ;;  %1894 = vmatprep.mubr.msk.f32.mxu1 %vm87_vm0, %v49_v54 }
  0x43   :  { %221 = vmatmul.mubr.f32.gmra.mrb[8].mxu0 %v32_v55  ;;  %261 = vmatmul.mubr.f32.gmra.mrb[8].mxu1 %v48_v56 }
  0x44   :  { %1887 = vmatprep.mubr.msk.f32.mxu0 %vm87_vm0, %v35_v57  ;;  %1895 = vmatprep.mubr.msk.f32.mxu1 %vm87_vm0, %v51_v58 }
  0x47   :  { %226 = vmatmul.mubr.f32.gmra.mrb[10].mxu0 %v34_v59  ;;  %266 = vmatmul.mubr.f32.gmra.mrb[10].mxu1 %v50_v60 }
  0x48   :  { %1888 = vmatprep.mubr.msk.f32.mxu0 %vm87_vm0, %v37_v61  ;;  %1896 = vmatprep.mubr.msk.f32.mxu1 %vm87_vm0, %v53_v62 }
  0x4b   :  { %231 = vmatmul.mubr.f32.gmra.mrb[12].mxu0 %v36_v63  ;;  %271 = vmatmul.mubr.f32.gmra.mrb[12].mxu1 %v52_v0 }
  0x4c   :  { %1889 = vmatprep.mubr.msk.f32.mxu0 %vm87_vm0, %v39_v1  ;;  %1897 = vmatprep.mubr.msk.f32.mxu1 %vm87_vm0, %v55_v2  ;;  %vm1858_vm0 = vcmask 1048512  }
  0x4f   :  { %236 = vmatmul.mubr.f32.gmra.mrb[14].mxu0 %v38_v3  ;;  %276 = vmatmul.mubr.f32.gmra.mrb[14].mxu1 %v54_v4 }
 0x106   :  { %v202_v6 = vpop.f32.mrb[0].mxu0  ;;  %v242_v7 = vpop.f32.mrb[0].mxu1 }
 0x107   :  { %v203_v8 = vadd.f32 %v2213_v5, %v202_v6  ;;  %v204_v9 = vpop.f32.mrb[1].mxu0  ;;  %v243_v10 = vadd.f32 %v2213_v5, %v242_v7  ;;  %v244_v11 = vpop.f32.mrb[1].mxu1 }
 0x109   :  { %v281_v13 = vmax.f32 %v203_v8, 0.0  ;;  %v289_v14 = vmax.f32 %v243_v10, 0.0 }
 0x10a   :  { %v207_v15 = vpop.f32.mrb[2].mxu0  ;;  %v247_v16 = vpop.f32.mrb[2].mxu1 }
 0x10b   :  { %v208_v17 = vadd.f32 %v2213_v5, %v207_v15  ;;  %v248_v18 = vadd.f32 %v2213_v5, %v247_v16  ;;  %v209_v19 = vpop.f32.mrb[3].mxu0  ;;  %v249_v20 = vpop.f32.mrb[3].mxu1  ;;  %v304_v21 = vmul.f32 %v2220_v12, %v281_v13  ;;  %v312_v22 = vmul.f32 %v2220_v12, %v289_v14 }
 0x10d   :  { %v282_v23 = vmax.f32 %v208_v17, 0.0  ;;  %v290_v24 = vmax.f32 %v248_v18, 0.0  ;;  %v321_v25 = vsel %vm320_vm1, %v304_v21, 0.0  ;;  %v345_v27 = vsel %vm320_vm1, %v312_v22, 0.0 }
 0x10e   :  { %322 = vadd.xlane.f32.xlu0 %v321_v25  ;;  %v212_v26 = vpop.f32.mrb[4].mxu0  ;;  %v252_v28 = vpop.f32.mrb[4].mxu1 }
 0x10f   :  { %v213_v29 = vadd.f32 %v2213_v5, %v212_v26  ;;  %v214_v30 = vpop.f32.mrb[5].mxu0  ;;  %v253_v31 = vadd.f32 %v2213_v5, %v252_v28  ;;  %v254_v32 = vpop.f32.mrb[5].mxu1  ;;  %v313_v33 = vmul.f32 %v2220_v12, %v290_v24  ;;  %v305_v34 = vmul.f32 %v2220_v12, %v282_v23 }
 0x111   :  { %v283_v35 = vmax.f32 %v213_v29, 0.0  ;;  %v291_v36 = vmax.f32 %v253_v31, 0.0  ;;  %v348_v37 = vsel %vm320_vm1, %v313_v33, 0.0  ;;  %v324_v39 = vsel %vm320_vm1, %v305_v34, 0.0 }
 0x112   :  { %346 = vadd.xlane.f32.xlu0 %v345_v27  ;;  %349 = vadd.xlane.f32.xlu1 %v348_v37  ;;  %v217_v38 = vpop.f32.mrb[6].mxu0  ;;  %v257_v40 = vpop.f32.mrb[6].mxu1  ;;  %v1965_v31 = vmov 0  }
 0x113   :  { %v218_v41 = vadd.f32 %v2213_v5, %v217_v38  ;;  %v219_v42 = vpop.f32.mrb[7].mxu0  ;;  %v258_v43 = vadd.f32 %v2213_v5, %v257_v40  ;;  %v306_v44 = vmul.f32 %v2220_v12, %v283_v35  ;;  %v259_v45 = vpop.f32.mrb[7].mxu1  ;;  %v314_v46 = vmul.f32 %v2220_v12, %v291_v36  ;;  %1962 = vset.pattern.permute.xlu0 %v1965_v31 }
 0x114   :  { %1963 = vset.pattern.permute.xlu1 %v1965_v31  ;;  %v1966_v42 = vmov 1966171168   ;;  %v2274_v45 = vstv %s2726_s4 }
 0x115   :  { %v284_v47 = vmax.f32 %v218_v41, 0.0  ;;  %v292_v48 = vmax.f32 %v258_v43, 0.0  ;;  %v327_v49 = vsel %vm320_vm1, %v306_v44, 0.0  ;;  %v351_v55 = vsel %vm320_vm1, %v314_v46, 0.0 }
 0x116   :  { %325 = vadd.xlane.f32.xlu0 %v324_v39  ;;  %328 = vadd.xlane.f32.xlu1 %v327_v49  ;;  %v222_v50 = vpop.f32.mrb[8].mxu0  ;;  %v262_v51 = vpop.f32.mrb[8].mxu1  ;;  %v405_v41 = vlaneseq  ;;  %v922_v43 = vunpack.c.l.s4 %v1966_v42 }
 0x117   :  { %v223_v52 = vadd.f32 %v2213_v5, %v222_v50  ;;  %v224_v53 = vpop.f32.mrb[9].mxu0  ;;  %v307_v54 = vmul.f32 %v2220_v12, %v284_v47  ;;  %v315_v56 = vmul.f32 %v2220_v12, %v292_v48  ;;  %v264_v57 = vpop.f32.mrb[9].mxu1  ;;  %v263_v61 = vadd.f32 %v2213_v5, %v262_v51 }
 0x118   :  { %v2269_v44 = vshrl.u32 %v405_v41, 7  ;;  %v923_v46 = vunpack.c.0.s8 %v922_v43 }
 0x119   :  { %v285_v58 = vmax.f32 %v223_v52, 0.0  ;;  %v330_v59 = vsel %vm320_vm1, %v307_v54, 0.0  ;;  %v354_v1 = vsel %vm320_vm1, %v315_v56, 0.0  ;;  %v293_v8 = vmax.f32 %v263_v61, 0.0 }
 0x11a   :  { %v227_v60 = vpop.f32.mrb[10].mxu0  ;;  %331 = vadd.xlane.f32.xlu1 %v330_v59  ;;  %352 = vadd.xlane.f32.xlu0 %v351_v55  ;;  %v267_v62 = vpop.f32.mrb[10].mxu1  ;;  %v2280_v47 = vsub.s32 1, %v2269_v44  ;;  %v2283_v48 = vsub.s32 2, %v2269_v44  ;;  %v2286_v49 = vsub.s32 3, %v2269_v44  ;;  %v2289_v51 = vsub.s32 4, %v2269_v44 }
 0x11b   :  { %v228_v63 = vadd.f32 %v2213_v5, %v227_v60  ;;  %v229_v0 = vpop.f32.mrb[11].mxu0  ;;  %v308_v2 = vmul.f32 %v2220_v12, %v285_v58  ;;  %v269_v3 = vpop.f32.mrb[11].mxu1  ;;  %v268_v9 = vadd.f32 %v2213_v5, %v267_v62  ;;  %v316_v22 = vmul.f32 %v2220_v12, %v293_v8 }
 0x11c   :  { %v2292_v52 = vsub.s32 5, %v2269_v44  ;;  %v2295_v53 = vsub.s32 6, %v2269_v44  ;;  %v2298_v54 = vsub.s32 7, %v2269_v44  ;;  %v2302_v56 = vsub.s32 %v923_v46, %v2269_v44 }
 0x11d   :  { %v286_v4 = vmax.f32 %v228_v63, 0.0  ;;  %v333_v6 = vsel %vm320_vm1, %v308_v2, 0.0  ;;  %v294_v20 = vmax.f32 %v268_v9, 0.0  ;;  %v357_v32 = vsel %vm320_vm1, %v316_v22, 0.0 }
 0x11e   :  { %v232_v7 = vpop.f32.mrb[12].mxu0  ;;  %355 = vadd.xlane.f32.xlu1 %v354_v1  ;;  %334 = vadd.xlane.f32.xlu0 %v333_v6  ;;  %v272_v10 = vpop.f32.mrb[12].mxu1 }
 0x11f   :  { %v233_v11 = vadd.f32 %v2213_v5, %v232_v7  ;;  %v234_v13 = vpop.f32.mrb[13].mxu0  ;;  %v309_v14 = vmul.f32 %v2220_v12, %v286_v4  ;;  %v273_v15 = vadd.f32 %v2213_v5, %v272_v10  ;;  %v274_v16 = vpop.f32.mrb[13].mxu1  ;;  %v317_v35 = vmul.f32 %v2220_v12, %v294_v20 }
 0x121   :  { %v287_v17 = vmax.f32 %v233_v11, 0.0  ;;  %v336_v18 = vsel %vm320_vm1, %v309_v14, 0.0  ;;  %v295_v24 = vmax.f32 %v273_v15, 0.0  ;;  %v360_v37 = vsel %vm320_vm1, %v317_v35, 0.0 }
 0x122   :  { %v237_v19 = vpop.f32.mrb[14].mxu0  ;;  %337 = vadd.xlane.f32.xlu1 %v336_v18  ;;  %v277_v21 = vpop.f32.mrb[14].mxu1 }
 0x123   :  { %v238_v23 = vadd.f32 %v2213_v5, %v237_v19  ;;  %v239_v25 = vpop.f32.mrb[15].mxu0  ;;  %v278_v26 = vadd.f32 %v2213_v5, %v277_v21  ;;  %v310_v27 = vmul.f32 %v2220_v12, %v287_v17  ;;  %v279_v28 = vpop.f32.mrb[15].mxu1  ;;  %v318_v36 = vmul.f32 %v2220_v12, %v295_v24 }
 0x125   :  { %v288_v29 = vmax.f32 %v238_v23, 0.0  ;;  %v339_v30 = vsel %vm320_vm1, %v310_v27, 0.0  ;;  %v296_v33 = vmax.f32 %v278_v26, 0.0  ;;  %v363_v39 = vsel %vm320_vm1, %v318_v36, 0.0 }
 0x126   :  { %340 = vadd.xlane.f32.xlu0 %v339_v30 }
 0x127   :  { %v311_v34 = vmul.f32 %v2220_v12, %v288_v29  ;;  %v319_v38 = vmul.f32 %v2220_v12, %v296_v33  ;;  %v2277_v12 = vsub.s32 0, %v2269_v44 }
 0x129   :  { %v342_v5 = vsel %vm320_vm1, %v311_v34, 0.0  ;;  %v366_v40 = vsel %vm320_vm1, %v319_v38, 0.0 }
 0x12a   :  { %343 = vadd.xlane.f32.xlu1 %v342_v5  ;;  %358 = vadd.xlane.f32.xlu0 %v357_v32 }
 0x12e   :  { %361 = vadd.xlane.f32.xlu1 %v360_v37  ;;  %364 = vadd.xlane.f32.xlu0 %v363_v39 }
 0x132   :  { %367 = vadd.xlane.f32.xlu1 %v366_v40 }
 0x19b   :  { %v323_v50 = vpop.xlane.xlu0 %322 }
 0x19c   :  { %v371_v55 = vadd.f32 %v2274_v45, %v323_v50 }
 0x19e   :  { %v408_v57 = vrot.slane %v371_v55, %v2277_v12  ;;  %v412_v58 = vrot.slane %v371_v55, %v2280_v47  ;;  %v416_v59 = vrot.slane %v371_v55, %v2283_v48  ;;  %v420_v60 = vrot.slane %v371_v55, %v2286_v49 }
 0x19f   :  { %v347_v61 = vpop.xlane.xlu0 %346  ;;  %v350_v62 = vpop.xlane.xlu1 %349  ;;  %v424_v63 = vrot.slane %v371_v55, %v2289_v51  ;;  %v428_v0 = vrot.slane %v371_v55, %v2292_v52  ;;  %v432_v1 = vrot.slane %v371_v55, %v2295_v53  ;;  %v436_v2 = vrot.slane %v371_v55, %v2298_v54 }
 0x1a0   :  { %v379_v3 = vadd.f32 %v2274_v45, %v347_v61  ;;  %v917_v4 = vcombine.low %v408_v57, %v412_v58  ;;  %v918_v6 = vcombine.low %v416_v59, %v420_v60  ;;  %v380_v7 = vadd.f32 %v2274_v45, %v350_v62 }
 0x1a1   :  { %v919_v8 = vcombine.low %v424_v63, %v428_v0  ;;  %v920_v9 = vcombine.low %v432_v1, %v436_v2 }
 0x1a2   :  { %v927_v10 = vrot.slane %v917_v4, %v2302_v56  ;;  %v934_v11 = vrot.slane %v918_v6, %v2302_v56  ;;  %v664_v13 = vrot.slane %v379_v3, %v2277_v12  ;;  %v668_v14 = vrot.slane %v379_v3, %v2280_v47 }
 0x1a3   :  { %v326_v15 = vpop.xlane.xlu0 %325  ;;  %v329_v16 = vpop.xlane.xlu1 %328  ;;  %v941_v17 = vrot.slane %v919_v8, %v2302_v56  ;;  %v948_v18 = vrot.slane %v920_v9, %v2302_v56  ;;  %v672_v19 = vrot.slane %v379_v3, %v2283_v48  ;;  %v676_v20 = vrot.slane %v379_v3, %v2286_v49 }
 0x1a4   :  { %v2323_v21 = vadd.f32 %v2274_v45, %v326_v15  ;;  %v2326_v22 = vadd.f32 %v2274_v45, %v329_v16  ;;  %v949_v23 = vcombine.low %v927_v10, %v934_v11  ;;  %v680_v24 = vrot.slane %v379_v3, %v2289_v51 }
 0x1a5   :  { %v950_v25 = vcombine.low %v941_v17, %v948_v18  ;;  %v684_v26 = vrot.slane %v379_v3, %v2292_v52  ;;  %v688_v27 = vrot.slane %v379_v3, %v2295_v53  ;;  %v692_v28 = vrot.slane %v379_v3, %v2298_v54 }
 0x1a6   :  { %v957_v29 = vrot.slane %v949_v23, %v2302_v56  ;;  %v1309_v30 = vcombine.low %v664_v13, %v668_v14  ;;  %v1310_v31 = vcombine.low %v672_v19, %v676_v20  ;;  %v696_v32 = vrot.slane %v380_v7, %v2277_v12 }
 0x1a7   :  { %v964_v33 = vrot.slane %v950_v25, %v2302_v56  ;;  %v332_v34 = vpop.xlane.xlu1 %331  ;;  %v353_v35 = vpop.xlane.xlu0 %352  ;;  %v1311_v36 = vcombine.low %v680_v24, %v684_v26  ;;  %v1312_v5 = vcombine.low %v688_v27, %v692_v28  ;;  %v700_v37 = vrot.slane %v380_v7, %v2280_v47 }
 0x1a8   :  { %v2337_v38 = vadd.f32 %v2274_v45, %v332_v34  ;;  %v2340_v39 = vadd.f32 %v2274_v45, %v353_v35  ;;  %v1319_v40 = vrot.slane %v1309_v30, %v2302_v56  ;;  %v1326_v42 = vrot.slane %v1310_v31, %v2302_v56 }
 0x1a9   :  { %v965_v43 = vcombine.low %v957_v29, %v964_v33  ;;  %v1333_v46 = vrot.slane %v1311_v36, %v2302_v56  ;;  %v1340_v50 = vrot.slane %v1312_v5, %v2302_v56  ;;  %v704_v55 = vrot.slane %v380_v7, %v2283_v48 }
 0x1aa   :  { %v1341_v57 = vcombine.low %v1319_v40, %v1326_v42  ;;  %v708_v58 = vrot.slane %v380_v7, %v2286_v49  ;;  %v712_v59 = vrot.slane %v380_v7, %v2289_v51  ;;  %v716_v60 = vrot.slane %v380_v7, %v2292_v52 }
 0x1ab   :  { %1702 = vperm.xlu0 %1962, %v965_v43   ;;  %v1342_v61 = vcombine.low %v1333_v46, %v1340_v50  ;;  %v356_v62 = vpop.xlane.xlu1 %355  ;;  %v720_v63 = vrot.slane %v380_v7, %v2295_v53  ;;  %v724_v0 = vrot.slane %v380_v7, %v2298_v54  ;;  %v1358_v1 = vcombine.low %v696_v32, %v700_v37  ;;  %v335_v20 = vpop.xlane.xlu0 %334 }
 0x1ac   :  { %v1349_v2 = vrot.slane %v1341_v57, %v2302_v56  ;;  %v2354_v3 = vadd.f32 %v2274_v45, %v356_v62  ;;  %v1359_v4 = vcombine.low %v704_v55, %v708_v58  ;;  %v1360_v6 = vcombine.low %v712_v59, %v716_v60 }
 0x1ad   :  { %v1356_v8 = vrot.slane %v1342_v61, %v2302_v56  ;;  %v1361_v9 = vcombine.low %v720_v63, %v724_v0  ;;  %v1368_v10 = vrot.slane %v1358_v1, %v2302_v56  ;;  %v440_v11 = vrot.slane %v2323_v21, %v2277_v12 }
 0x1ae   :  { %v1375_v13 = vrot.slane %v1359_v4, %v2302_v56  ;;  %v1382_v7 = vrot.slane %v1360_v6, %v2302_v56  ;;  %v444_v14 = vrot.slane %v2323_v21, %v2280_v47  ;;  %v448_v15 = vrot.slane %v2323_v21, %v2283_v48 }
 0x1af   :  { %v1357_v16 = vcombine.low %v1349_v2, %v1356_v8  ;;  %v1389_v17 = vrot.slane %v1361_v9, %v2302_v56  ;;  %v452_v18 = vrot.slane %v2323_v21, %v2286_v49  ;;  %v456_v19 = vrot.slane %v2323_v21, %v2289_v51  ;;  %v338_v27 = vpop.xlane.xlu1 %337 }
 0x1b0   :  { %v1390_v23 = vcombine.low %v1368_v10, %v1375_v13  ;;  %v460_v24 = vrot.slane %v2323_v21, %v2292_v52  ;;  %v464_v25 = vrot.slane %v2323_v21, %v2295_v53  ;;  %v468_v26 = vrot.slane %v2323_v21, %v2298_v54 }
 0x1b1   :  { %1726 = vperm.xlu1 %1963, %v1357_v16   ;;  %v1391_v28 = vcombine.low %v1382_v7, %v1389_v17  ;;  %v966_v29 = vcombine.low %v440_v11, %v444_v14  ;;  %v967_v30 = vcombine.low %v448_v15, %v452_v18  ;;  %v2378_v31 = vadd.f32 %v2274_v45, %v338_v27 }
 0x1b2   :  { %v1398_v32 = vrot.slane %v1390_v23, %v2302_v56  ;;  %v968_v33 = vcombine.low %v456_v19, %v460_v24  ;;  %v969_v34 = vcombine.low %v464_v25, %v468_v26  ;;  %v2382_v35 = vadd.f32 %v2274_v45, %v335_v20 }
 0x1b3   :  { %v1405_v36 = vrot.slane %v1391_v28, %v2302_v56  ;;  %v976_v5 = vrot.slane %v966_v29, %v2302_v56  ;;  %v983_v21 = vrot.slane %v967_v30, %v2302_v56  ;;  %v472_v37 = vrot.slane %v2326_v22, %v2277_v12  ;;  %v341_v59 = vpop.xlane.xlu0 %340 }
 0x1b4   :  { %v990_v40 = vrot.slane %v968_v33, %v2302_v56  ;;  %v997_v42 = vrot.slane %v969_v34, %v2302_v56  ;;  %v476_v43 = vrot.slane %v2326_v22, %v2280_v47  ;;  %v480_v46 = vrot.slane %v2326_v22, %v2283_v48 }
 0x1b5   :  { %v1406_v50 = vcombine.low %v1398_v32, %v1405_v36  ;;  %v998_v55 = vcombine.low %v976_v5, %v983_v21  ;;  %v484_v57 = vrot.slane %v2326_v22, %v2286_v49  ;;  %v488_v58 = vrot.slane %v2326_v22, %v2289_v51 }
 0x1b6   :  { %v999_v60 = vcombine.low %v990_v40, %v997_v42  ;;  %v492_v61 = vrot.slane %v2326_v22, %v2292_v52  ;;  %v496_v62 = vrot.slane %v2326_v22, %v2295_v53  ;;  %v500_v63 = vrot.slane %v2326_v22, %v2298_v54 }
 0x1b7   :  { %1729 = vperm.xlu0 %1962, %v1406_v50   ;;  %v1006_v0 = vrot.slane %v998_v55, %v2302_v56  ;;  %v1015_v1 = vcombine.low %v472_v37, %v476_v43  ;;  %v1016_v2 = vcombine.low %v480_v46, %v484_v57  ;;  %v344_v4 = vpop.xlane.xlu1 %343  ;;  %v2407_v6 = vadd.f32 %v2274_v45, %v341_v59  ;;  %v359_v26 = vpop.xlane.xlu0 %358 }
 0x1b8   :  { %v1013_v8 = vrot.slane %v999_v60, %v2302_v56  ;;  %v1017_v9 = vcombine.low %v488_v58, %v492_v61  ;;  %v1018_v10 = vcombine.low %v496_v62, %v500_v63  ;;  %v2411_v11 = vadd.f32 %v2274_v45, %v344_v4 }
 0x1b9   :  { %v1025_v13 = vrot.slane %v1015_v1, %v2302_v56  ;;  %v1032_v22 = vrot.slane %v1016_v2, %v2302_v56  ;;  %v728_v7 = vrot.slane %v2340_v39, %v2277_v12  ;;  %v732_v14 = vrot.slane %v2340_v39, %v2280_v47 }
 0x1ba   :  { %v1014_v15 = vcombine.low %v1006_v0, %v1013_v8  ;;  %v1039_v16 = vrot.slane %v1017_v9, %v2302_v56  ;;  %v1046_v17 = vrot.slane %v1018_v10, %v2302_v56  ;;  %v736_v18 = vrot.slane %v2340_v39, %v2283_v48 }
 0x1bb   :  { %v1047_v19 = vcombine.low %v1025_v13, %v1032_v22  ;;  %v740_v20 = vrot.slane %v2340_v39, %v2286_v49  ;;  %v744_v23 = vrot.slane %v2340_v39, %v2289_v51  ;;  %v748_v24 = vrot.slane %v2340_v39, %v2292_v52  ;;  %v362_v25 = vpop.xlane.xlu1 %361 }
 0x1bc   :  { %1705 = vperm.xlu1 %1963, %v1014_v15   ;;  %v1048_v27 = vcombine.low %v1039_v16, %v1046_v17  ;;  %v752_v28 = vrot.slane %v2340_v39, %v2295_v53  ;;  %v756_v29 = vrot.slane %v2340_v39, %v2298_v54  ;;  %v1407_v30 = vcombine.low %v728_v7, %v732_v14 }
 0x1bd   :  { %v1055_v32 = vrot.slane %v1047_v19, %v2302_v56  ;;  %v1408_v33 = vcombine.low %v736_v18, %v740_v20  ;;  %v1409_v34 = vcombine.low %v744_v23, %v748_v24  ;;  %v2435_v36 = vadd.f32 %v2274_v45, %v362_v25 }
 0x1be   :  { %v1062_v5 = vrot.slane %v1048_v27, %v2302_v56  ;;  %v1410_v21 = vcombine.low %v752_v28, %v756_v29  ;;  %v1417_v37 = vrot.slane %v1407_v30, %v2302_v56  ;;  %v2440_v40 = vadd.f32 %v2274_v45, %v359_v26 }
 0x1bf   :  { %v1424_v42 = vrot.slane %v1408_v33, %v2302_v56  ;;  %v1431_v39 = vrot.slane %v1409_v34, %v2302_v56  ;;  %v504_v43 = vrot.slane %v2337_v38, %v2277_v12  ;;  %v508_v46 = vrot.slane %v2337_v38, %v2280_v47  ;;  %v368_v59 = vpop.xlane.xlu1 %367 }
 0x1c0   :  { %v1063_v50 = vcombine.low %v1055_v32, %v1062_v5  ;;  %v1438_v55 = vrot.slane %v1410_v21, %v2302_v56  ;;  %v512_v57 = vrot.slane %v2337_v38, %v2283_v48  ;;  %v516_v58 = vrot.slane %v2337_v38, %v2286_v49 }
 0x1c1   :  { %v1439_v60 = vcombine.low %v1417_v37, %v1424_v42  ;;  %v520_v61 = vrot.slane %v2337_v38, %v2289_v51  ;;  %v524_v62 = vrot.slane %v2337_v38, %v2292_v52  ;;  %v528_v63 = vrot.slane %v2337_v38, %v2295_v53 }
 0x1c2   :  { %1708 = vperm.xlu1 %1963, %v1063_v50   ;;  %v1440_v0 = vcombine.low %v1431_v39, %v1438_v55  ;;  %v532_v1 = vrot.slane %v2337_v38, %v2298_v54  ;;  %v1064_v2 = vcombine.low %v504_v43, %v508_v46  ;;  %v1065_v4 = vcombine.low %v512_v57, %v516_v58  ;;  %v365_v58 = vpop.xlane.xlu0 %364 }
 0x1c3   :  { %v1447_v8 = vrot.slane %v1439_v60, %v2302_v56  ;;  %v1066_v9 = vcombine.low %v520_v61, %v524_v62  ;;  %v2463_v10 = vadd.f32 %v2274_v45, %v368_v59  ;;  %v760_v13 = vrot.slane %v2354_v3, %v2277_v12 }
 0x1c4   :  { %v1454_v22 = vrot.slane %v1440_v0, %v2302_v56  ;;  %v1067_v7 = vcombine.low %v528_v63, %v532_v1  ;;  %v1074_v14 = vrot.slane %v1064_v2, %v2302_v56  ;;  %v1081_v15 = vrot.slane %v1065_v4, %v2302_v56 }
 0x1c5   :  { %v1088_v38 = vrot.slane %v1066_v9, %v2302_v56  ;;  %v764_v16 = vrot.slane %v2354_v3, %v2280_v47  ;;  %v768_v17 = vrot.slane %v2354_v3, %v2283_v48  ;;  %v772_v18 = vrot.slane %v2354_v3, %v2286_v49 }
 0x1c6   :  { %v1455_v19 = vcombine.low %v1447_v8, %v1454_v22  ;;  %v1095_v20 = vrot.slane %v1067_v7, %v2302_v56  ;;  %v1096_v23 = vcombine.low %v1074_v14, %v1081_v15  ;;  %v776_v24 = vrot.slane %v2354_v3, %v2289_v51 }
 0x1c7   :  { %v780_v25 = vrot.slane %v2354_v3, %v2292_v52  ;;  %v784_v26 = vrot.slane %v2354_v3, %v2295_v53  ;;  %v788_v27 = vrot.slane %v2354_v3, %v2298_v54  ;;  %v1456_v28 = vcombine.low %v760_v13, %v764_v16 }
 0x1c8   :  { %1732 = vperm.xlu1 %1963, %v1455_v19   ;;  %v1097_v29 = vcombine.low %v1088_v38, %v1095_v20  ;;  %v1104_v30 = vrot.slane %v1096_v23, %v2302_v56  ;;  %v1457_v32 = vcombine.low %v768_v17, %v772_v18  ;;  %v536_v33 = vrot.slane %v2382_v35, %v2277_v12 }
 0x1c9   :  { %v1458_v34 = vcombine.low %v776_v24, %v780_v25  ;;  %v1459_v5 = vcombine.low %v784_v26, %v788_v27  ;;  %v1466_v21 = vrot.slane %v1456_v28, %v2302_v56  ;;  %v540_v37 = vrot.slane %v2382_v35, %v2280_v47 }
 0x1ca   :  { %v1111_v42 = vrot.slane %v1097_v29, %v2302_v56  ;;  %v1473_v3 = vrot.slane %v1457_v32, %v2302_v56  ;;  %v544_v39 = vrot.slane %v2382_v35, %v2283_v48  ;;  %v548_v43 = vrot.slane %v2382_v35, %v2286_v49 }
 0x1cb   :  { %v1480_v46 = vrot.slane %v1458_v34, %v2302_v56  ;;  %v1487_v50 = vrot.slane %v1459_v5, %v2302_v56  ;;  %v552_v55 = vrot.slane %v2382_v35, %v2289_v51  ;;  %v556_v57 = vrot.slane %v2382_v35, %v2292_v52 }
 0x1cc   :  { %v1112_v59 = vcombine.low %v1104_v30, %v1111_v42  ;;  %v1488_v60 = vcombine.low %v1466_v21, %v1473_v3  ;;  %v560_v61 = vrot.slane %v2382_v35, %v2295_v53  ;;  %v564_v62 = vrot.slane %v2382_v35, %v2298_v54 }
 0x1cd   :  { %v1489_v63 = vcombine.low %v1480_v46, %v1487_v50  ;;  %v1113_v0 = vcombine.low %v536_v33, %v540_v37  ;;  %v1114_v1 = vcombine.low %v544_v39, %v548_v43  ;;  %v1115_v2 = vcombine.low %v552_v55, %v556_v57 }
 0x1ce   :  { %1711 = vperm.xlu1 %1963, %v1112_v59   ;;  %v1496_v4 = vrot.slane %v1488_v60, %v2302_v56  ;;  %v1116_v8 = vcombine.low %v560_v61, %v564_v62  ;;  %v2510_v9 = vadd.f32 %v2274_v45, %v365_v58  ;;  %v568_v13 = vrot.slane %v2378_v31, %v2277_v12 }
 0x1cf   :  { %v1503_v22 = vrot.slane %v1489_v63, %v2302_v56  ;;  %v1123_v7 = vrot.slane %v1113_v0, %v2302_v56  ;;  %v1130_v35 = vrot.slane %v1114_v1, %v2302_v56  ;;  %v1137_v14 = vrot.slane %v1115_v2, %v2302_v56 }
 0x1d0   :  { %v1144_v15 = vrot.slane %v1116_v8, %v2302_v56  ;;  %v572_v38 = vrot.slane %v2378_v31, %v2280_v47  ;;  %v576_v45 = vrot.slane %v2378_v31, %v2283_v48  ;;  %v580_v16 = vrot.slane %v2378_v31, %v2286_v49 }
 0x1d1   :  { %v1504_v17 = vcombine.low %v1496_v4, %v1503_v22  ;;  %v1145_v18 = vcombine.low %v1123_v7, %v1130_v35  ;;  %v584_v19 = vrot.slane %v2378_v31, %v2289_v51  ;;  %v588_v20 = vrot.slane %v2378_v31, %v2292_v52 }
 0x1d2   :  { %v1146_v23 = vcombine.low %v1137_v14, %v1144_v15  ;;  %v592_v24 = vrot.slane %v2378_v31, %v2295_v53  ;;  %v596_v25 = vrot.slane %v2378_v31, %v2298_v54  ;;  %v1162_v26 = vcombine.low %v568_v13, %v572_v38 }
 0x1d3   :  { %1735 = vperm.xlu0 %1962, %v1504_v17   ;;  %v1153_v27 = vrot.slane %v1145_v18, %v2302_v56  ;;  %v1163_v28 = vcombine.low %v576_v45, %v580_v16  ;;  %v1164_v29 = vcombine.low %v584_v19, %v588_v20  ;;  %v824_v30 = vrot.slane %v2435_v36, %v2277_v12 }
 0x1d4   :  { %v1160_v32 = vrot.slane %v1146_v23, %v2302_v56  ;;  %v1165_v33 = vcombine.low %v592_v24, %v596_v25  ;;  %v1172_v34 = vrot.slane %v1162_v26, %v2302_v56  ;;  %v828_v5 = vrot.slane %v2435_v36, %v2280_v47 }
 0x1d5   :  { %v1179_v21 = vrot.slane %v1163_v28, %v2302_v56  ;;  %v1186_v31 = vrot.slane %v1164_v29, %v2302_v56  ;;  %v832_v37 = vrot.slane %v2435_v36, %v2283_v48  ;;  %v836_v42 = vrot.slane %v2435_v36, %v2286_v49 }
 0x1d6   :  { %v1161_v3 = vcombine.low %v1153_v27, %v1160_v32  ;;  %v1193_v39 = vrot.slane %v1165_v33, %v2302_v56  ;;  %v840_v43 = vrot.slane %v2435_v36, %v2289_v51  ;;  %v844_v46 = vrot.slane %v2435_v36, %v2292_v52 }
 0x1d7   :  { %v1194_v50 = vcombine.low %v1172_v34, %v1179_v21  ;;  %v848_v55 = vrot.slane %v2435_v36, %v2295_v53  ;;  %v852_v57 = vrot.slane %v2435_v36, %v2298_v54  ;;  %v1554_v58 = vcombine.low %v824_v30, %v828_v5 }
 0x1d8   :  { %1714 = vperm.xlu1 %1963, %v1161_v3   ;;  %v1195_v59 = vcombine.low %v1186_v31, %v1193_v39  ;;  %v1555_v60 = vcombine.low %v832_v37, %v836_v42  ;;  %v1556_v61 = vcombine.low %v840_v43, %v844_v46  ;;  %v600_v62 = vrot.slane %v2407_v6, %v2277_v12 }
 0x1d9   :  { %v1202_v63 = vrot.slane %v1194_v50, %v2302_v56  ;;  %v1557_v0 = vcombine.low %v848_v55, %v852_v57  ;;  %v1564_v1 = vrot.slane %v1554_v58, %v2302_v56  ;;  %v604_v2 = vrot.slane %v2407_v6, %v2280_v47 }
 0x1da   :  { %v1209_v4 = vrot.slane %v1195_v59, %v2302_v56  ;;  %v1571_v36 = vrot.slane %v1555_v60, %v2302_v56  ;;  %v1578_v8 = vrot.slane %v1556_v61, %v2302_v56  ;;  %v608_v13 = vrot.slane %v2407_v6, %v2283_v48 }
 0x1db   :  { %v1585_v22 = vrot.slane %v1557_v0, %v2302_v56  ;;  %v612_v7 = vrot.slane %v2407_v6, %v2286_v49  ;;  %v616_v35 = vrot.slane %v2407_v6, %v2289_v51  ;;  %v620_v14 = vrot.slane %v2407_v6, %v2292_v52 }
 0x1dc   :  { %v1210_v15 = vcombine.low %v1202_v63, %v1209_v4  ;;  %v1586_v38 = vcombine.low %v1564_v1, %v1571_v36  ;;  %v624_v45 = vrot.slane %v2407_v6, %v2295_v53  ;;  %v628_v16 = vrot.slane %v2407_v6, %v2298_v54 }
 0x1dd   :  { %v1587_v17 = vcombine.low %v1578_v8, %v1585_v22  ;;  %v1211_v18 = vcombine.low %v600_v62, %v604_v2  ;;  %v1212_v19 = vcombine.low %v608_v13, %v612_v7  ;;  %v1213_v20 = vcombine.low %v616_v35, %v620_v14 }
 0x1de   :  { %1717 = vperm.xlu1 %1963, %v1210_v15   ;;  %v1594_v23 = vrot.slane %v1586_v38, %v2302_v56  ;;  %v1214_v24 = vcombine.low %v624_v45, %v628_v16  ;;  %v888_v25 = vrot.slane %v2463_v10, %v2277_v12  ;;  %v892_v26 = vrot.slane %v2463_v10, %v2280_v47 }
 0x1df   :  { %v1601_v27 = vrot.slane %v1587_v17, %v2302_v56  ;;  %v1221_v28 = vrot.slane %v1211_v18, %v2302_v56  ;;  %v1228_v6 = vrot.slane %v1212_v19, %v2302_v56  ;;  %v1235_v29 = vrot.slane %v1213_v20, %v2302_v56 }
 0x1e0   :  { %v1242_v30 = vrot.slane %v1214_v24, %v2302_v56  ;;  %v896_v32 = vrot.slane %v2463_v10, %v2283_v48  ;;  %v900_v33 = vrot.slane %v2463_v10, %v2286_v49  ;;  %v904_v34 = vrot.slane %v2463_v10, %v2289_v51 }
 0x1e1   :  { %v1602_v5 = vcombine.low %v1594_v23, %v1601_v27  ;;  %v1243_v21 = vcombine.low %v1221_v28, %v1228_v6  ;;  %v908_v31 = vrot.slane %v2463_v10, %v2292_v52  ;;  %v912_v37 = vrot.slane %v2463_v10, %v2295_v53 }
 0x1e2   :  { %v1244_v42 = vcombine.low %v1235_v29, %v1242_v30  ;;  %v916_v3 = vrot.slane %v2463_v10, %v2298_v54  ;;  %v1652_v39 = vcombine.low %v888_v25, %v892_v26  ;;  %v1653_v43 = vcombine.low %v896_v32, %v900_v33 }
 0x1e3   :  { %1741 = vperm.xlu0 %1962, %v1602_v5   ;;  %v1251_v46 = vrot.slane %v1243_v21, %v2302_v56  ;;  %v1654_v50 = vcombine.low %v904_v34, %v908_v31  ;;  %v632_v55 = vrot.slane %v2411_v11, %v2277_v12  ;;  %v636_v57 = vrot.slane %v2411_v11, %v2280_v47 }
 0x1e4   :  { %v1258_v58 = vrot.slane %v1244_v42, %v2302_v56  ;;  %v1655_v59 = vcombine.low %v912_v37, %v916_v3  ;;  %v1662_v60 = vrot.slane %v1652_v39, %v2302_v56  ;;  %v1669_v61 = vrot.slane %v1653_v43, %v2302_v56 }
 0x1e5   :  { %v1676_v10 = vrot.slane %v1654_v50, %v2302_v56  ;;  %v640_v62 = vrot.slane %v2411_v11, %v2283_v48  ;;  %v644_v63 = vrot.slane %v2411_v11, %v2286_v49  ;;  %v648_v0 = vrot.slane %v2411_v11, %v2289_v51 }
 0x1e6   :  { %v1259_v1 = vcombine.low %v1251_v46, %v1258_v58  ;;  %v1683_v2 = vrot.slane %v1655_v59, %v2302_v56  ;;  %v1684_v4 = vcombine.low %v1662_v60, %v1669_v61  ;;  %v652_v36 = vrot.slane %v2411_v11, %v2292_v52 }
 0x1e7   :  { %v656_v8 = vrot.slane %v2411_v11, %v2295_v53  ;;  %v660_v13 = vrot.slane %v2411_v11, %v2298_v54  ;;  %v1260_v22 = vcombine.low %v632_v55, %v636_v57  ;;  %v1261_v7 = vcombine.low %v640_v62, %v644_v63 }
 0x1e8   :  { %1720 = vperm.xlu1 %1963, %v1259_v1   ;;  %v1685_v35 = vcombine.low %v1676_v10, %v1683_v2  ;;  %v1692_v14 = vrot.slane %v1684_v4, %v2302_v56  ;;  %v1262_v15 = vcombine.low %v648_v0, %v652_v36  ;;  %v792_v38 = vrot.slane %v2440_v40, %v2277_v12 }
 0x1e9   :  { %v1263_v45 = vcombine.low %v656_v8, %v660_v13  ;;  %v1270_v16 = vrot.slane %v1260_v22, %v2302_v56  ;;  %v1277_v17 = vrot.slane %v1261_v7, %v2302_v56  ;;  %v796_v18 = vrot.slane %v2440_v40, %v2280_v47 }
 0x1ea   :  { %v1699_v11 = vrot.slane %v1685_v35, %v2302_v56  ;;  %v1284_v19 = vrot.slane %v1262_v15, %v2302_v56  ;;  %v800_v20 = vrot.slane %v2440_v40, %v2283_v48  ;;  %v804_v23 = vrot.slane %v2440_v40, %v2286_v49 }
 0x1eb   :  { %v1291_v24 = vrot.slane %v1263_v45, %v2302_v56  ;;  %v1292_v25 = vcombine.low %v1270_v16, %v1277_v17  ;;  %v808_v26 = vrot.slane %v2440_v40, %v2289_v51  ;;  %v812_v27 = vrot.slane %v2440_v40, %v2292_v52 }
 0x1ec   :  { %v1700_v28 = vcombine.low %v1692_v14, %v1699_v11  ;;  %v816_v6 = vrot.slane %v2440_v40, %v2295_v53  ;;  %v820_v29 = vrot.slane %v2440_v40, %v2298_v54  ;;  %v1505_v30 = vcombine.low %v792_v38, %v796_v18 }
 0x1ed   :  { %v1293_v32 = vcombine.low %v1284_v19, %v1291_v24  ;;  %v1300_v33 = vrot.slane %v1292_v25, %v2302_v56  ;;  %v1506_v34 = vcombine.low %v800_v20, %v804_v23  ;;  %v1507_v5 = vcombine.low %v808_v26, %v812_v27 }
 0x1ee   :  { %1747 = vperm.xlu0 %1962, %v1700_v28   ;;  %v1508_v21 = vcombine.low %v816_v6, %v820_v29  ;;  %v1515_v31 = vrot.slane %v1505_v30, %v2302_v56  ;;  %v856_v37 = vrot.slane %v2510_v9, %v2277_v12  ;;  %v860_v42 = vrot.slane %v2510_v9, %v2280_v47 }
 0x1ef   :  { %v1307_v3 = vrot.slane %v1293_v32, %v2302_v56  ;;  %v1522_v40 = vrot.slane %v1506_v34, %v2302_v56  ;;  %v1529_v39 = vrot.slane %v1507_v5, %v2302_v56  ;;  %v864_v43 = vrot.slane %v2510_v9, %v2283_v48 }
 0x1f0   :  { %v1536_v46 = vrot.slane %v1508_v21, %v2302_v56  ;;  %v868_v50 = vrot.slane %v2510_v9, %v2286_v49  ;;  %v872_v12 = vrot.slane %v2510_v9, %v2289_v51  ;;  %v876_v47 = vrot.slane %v2510_v9, %v2292_v52 }
 0x1f1   :  { %v1308_v55 = vcombine.low %v1300_v33, %v1307_v3  ;;  %v1537_v57 = vcombine.low %v1515_v31, %v1522_v40  ;;  %v880_v58 = vrot.slane %v2510_v9, %v2295_v53  ;;  %v884_v59 = vrot.slane %v2510_v9, %v2298_v54 }
 0x1f2   :  { %v1538_v48 = vcombine.low %v1529_v39, %v1536_v46  ;;  %v1603_v60 = vcombine.low %v856_v37, %v860_v42  ;;  %v1604_v61 = vcombine.low %v864_v43, %v868_v50  ;;  %v1605_v10 = vcombine.low %v872_v12, %v876_v47 }
 0x1f3   :  { %1723 = vperm.xlu1 %1963, %v1308_v55   ;;  %v1545_v49 = vrot.slane %v1537_v57, %v2302_v56  ;;  %v1606_v62 = vcombine.low %v880_v58, %v884_v59  ;;  %v2676_v15 = vand.u32 127, %v405_v41 }
 0x1f4   :  { %v1552_v51 = vrot.slane %v1538_v48, %v2302_v56  ;;  %v1613_v52 = vrot.slane %v1603_v60, %v2302_v56  ;;  %v1620_v63 = vrot.slane %v1604_v61, %v2302_v56  ;;  %v1627_v0 = vrot.slane %v1605_v10, %v2302_v56 }
 0x1f5   :  { %v1634_v53 = vrot.slane %v1606_v62, %v2302_v56  ;;  %v1755_v38 = vadd.s32 4294967288, %v2676_v15  ;;  %v1762_v45 = vadd.s32 4294967280, %v2676_v15  ;;  %v1769_v16 = vadd.s32 4294967272, %v2676_v15 }
 0x1f6   :  { %v1553_v1 = vcombine.low %v1545_v49, %v1552_v51  ;;  %v1635_v54 = vcombine.low %v1613_v52, %v1620_v63  ;;  %v1776_v17 = vadd.s32 4294967264, %v2676_v15  ;;  %v1804_v11 = vadd.s32 4294967232, %v2676_v15 }
 0x1f7   :  { %v1636_v9 = vcombine.low %v1627_v0, %v1634_v53  ;;  %v1758_v19 = vsub.s32 %v1755_v38, %v2269_v44  ;;  %v1783_v20 = vadd.s32 4294967256, %v2676_v15  ;;  %v1765_v23 = vsub.s32 %v1762_v45, %v2269_v44 }
 0x1f8   :  { %1738 = vperm.xlu1 %1963, %v1553_v1   ;;  %v1643_v2 = vrot.slane %v1635_v54, %v2302_v56  ;;  %v1790_v41 = vadd.s32 4294967248, %v2676_v15  ;;  %v1753_v24 = vsub.s32 %v2676_v15, %v2269_v44  ;;  %v1772_v26 = vsub.s32 %v1769_v16, %v2269_v44 }
 0x1f9   :  { %v1650_v4 = vrot.slane %v1636_v9, %v2302_v56  ;;  %v1779_v27 = vsub.s32 %v1776_v17, %v2269_v44  ;;  %v1807_v28 = vsub.s32 %v1804_v11, %v2269_v44  ;;  %v1786_v29 = vsub.s32 %v1783_v20, %v2269_v44 }
 0x1fa   :  { %v1797_v30 = vadd.s32 4294967240, %v2676_v15  ;;  %v1811_v32 = vadd.s32 4294967224, %v2676_v15  ;;  %v1793_v34 = vsub.s32 %v1790_v41, %v2269_v44  ;;  %v1818_v37 = vadd.s32 4294967216, %v2676_v15 }
 0x1fb   :  { %v1651_v36 = vcombine.low %v1643_v2, %v1650_v4  ;;  %v1825_v40 = vadd.s32 4294967208, %v2676_v15  ;;  %v1839_v47 = vadd.s32 4294967192, %v2676_v15  ;;  %v1832_v55 = vadd.s32 4294967200, %v2676_v15 }
 0x1fc   :  { %v1800_v46 = vsub.s32 %v1797_v30, %v2269_v44  ;;  %v1814_v57 = vsub.s32 %v1811_v32, %v2269_v44  ;;  %v1821_v48 = vsub.s32 %v1818_v37, %v2269_v44  ;;  %v1846_v9 = vadd.s32 4294967184, %v2676_v15 }
 0x1fd   :  { %1744 = vperm.xlu1 %1963, %v1651_v36   ;;  %v1828_v61 = vsub.s32 %v1825_v40, %v2269_v44  ;;  %v1842_v63 = vsub.s32 %v1839_v47, %v2269_v44  ;;  %v1835_v0 = vsub.s32 %v1832_v55, %v2269_v44  ;;  %v1853_v36 = vadd.s32 4294967176, %v2676_v15 }
 0x1fe   :  { %v1849_v45 = vsub.s32 %v1846_v9, %v2269_v44 }
 0x1ff   :  { %v1856_v17 = vsub.s32 %v1853_v36, %v2269_v44 }
 0x22a   :  { %v1703_v25 = vpop.permute.xlu0 %1702 }
 0x22b   :  { %v1754_v21 = vrot.slane %v1703_v25, %v1753_v24 }
 0x230   :  { %v1727_v8 = vpop.permute.xlu1 %1726 }
 0x231   :  { %v1808_v51 = vrot.slane %v1727_v8, %v1807_v28 }
 0x236   :  { %v1730_v31 = vpop.permute.xlu0 %1729 }
 0x237   :  { %v1815_v53 = vrot.slane %v1730_v31, %v1814_v57 }
 0x23b   :  { %v1706_v13 = vpop.permute.xlu1 %1705 }
 0x23c   :  { %v1759_v6 = vrot.slane %v1706_v13, %v1758_v19 }
 0x23e   :  { %v1761_v39 = vsel %vm1760_vm2, %v1759_v6, %v1754_v21 }
 0x241   :  { %v1709_v22 = vpop.permute.xlu1 %1708 }
 0x242   :  { %v1766_v33 = vrot.slane %v1709_v22, %v1765_v23  ;;  %v387_v23 = vld [vmem:[%s2727_s5] sm:$0x1] }
 0x243   :  { %vm388_vm1 = vcmp.eq.s32.totalorder %v387_v23, 4294967295 }
 0x244   :  { %v1768_v50 = vsel %vm1767_vm3, %v1766_v33, %v1761_v39 }
 0x247   :  { %v2673_v7 = vpop.permute.xlu1 %1732 }
 0x248   :  { %v1822_v2 = vrot.slane %v2673_v7, %v1821_v48 }
 0x24d   :  { %v1712_v35 = vpop.permute.xlu1 %1711 }
 0x24e   :  { %v1773_v42 = vrot.slane %v1712_v35, %v1772_v26 }
 0x250   :  { %v1775_v58 = vsel %vm1774_vm4, %v1773_v42, %v1768_v50 }
 0x252   :  { %v1736_v59 = vpop.permute.xlu0 %1735 }
 0x253   :  { %v1829_v13 = vrot.slane %v1736_v59, %v1828_v61 }
 0x257   :  { %v1715_v14 = vpop.permute.xlu1 %1714 }
 0x258   :  { %v1780_v3 = vrot.slane %v1715_v14, %v1779_v27 }
 0x25a   :  { %v1782_v60 = vsel %vm1781_vm5, %v1780_v3, %v1775_v58 }
 0x25d   :  { %v1718_v18 = vpop.permute.xlu1 %1717 }
 0x25e   :  { %v1787_v43 = vrot.slane %v1718_v18, %v1786_v29 }
 0x260   :  { %v1789_v49 = vsel %vm1788_vm6, %v1787_v43, %v1782_v60 }
 0x262   :  { %v1742_v1 = vpop.permute.xlu0 %1741 }
 0x263   :  { %v1843_v16 = vrot.slane %v1742_v1, %v1842_v63 }
 0x267   :  { %v1721_v5 = vpop.permute.xlu1 %1720 }
 0x268   :  { %v1794_v12 = vrot.slane %v1721_v5, %v1793_v34 }
 0x26a   :  { %v1796_v52 = vsel %vm1795_vm7, %v1794_v12, %v1789_v49 }
 0x26d   :  { %v1748_v7 = vpop.permute.xlu0 %1747 }
 0x26e   :  { %v1857_v20 = vrot.slane %v1748_v7, %v1856_v17 }
 0x272   :  { %v1724_v10 = vpop.permute.xlu1 %1723 }
 0x273   :  { %v1801_v62 = vrot.slane %v1724_v10, %v1800_v46 }
 0x275   :  { %v1803_v54 = vsel %vm1802_vm8, %v1801_v62, %v1796_v52 }
 0x276   :  { %v1810_v4 = vsel %vm1809_vm9, %v1808_v51, %v1803_v54 }
 0x277   :  { %v1817_v8 = vsel %vm1816_vm10, %v1815_v53, %v1810_v4  ;;  %v1739_v22 = vpop.permute.xlu1 %1738 }
 0x278   :  { %v1824_v35 = vsel %vm1823_vm11, %v1822_v2, %v1817_v8  ;;  %v1836_v14 = vrot.slane %v1739_v22, %v1835_v0 }
 0x279   :  { %v1831_v38 = vsel %vm1830_vm12, %v1829_v13, %v1824_v35 }
 0x27a   :  { %v1838_v18 = vsel %vm1837_vm13, %v1836_v14, %v1831_v38 }
 0x27b   :  { %v1845_v15 = vsel %vm1844_vm14, %v1843_v16, %v1838_v18 }
 0x27c   :  { %v1745_v11 = vpop.permute.xlu1 %1744 }
 0x27d   :  { %v1850_v19 = vrot.slane %v1745_v11, %v1849_v45 }
 0x27f   :  { %v1852_v41 = vsel %vm1851_vm15, %v1850_v19, %v1845_v15 }
 0x280   :  { %v1859_v24 = vsel %vm1858_vm0, %v1857_v20, %v1852_v41 }
 0x281   :  { %v1866_v25 = vrot.slane %v1859_v24, %v2302_v56 }
 0x283   :  { %v1873_v26 = vrot.slane %v1866_v25, %v2302_v56 }
 0x285   :  { %v1875_v44 = vsel %vm388_vm1, -100.0, %v1873_v26 }
 0x286   :  { %1876 = vst [vmem:[%s2728_s6] sm:$0x1] %v1875_v44 }

</bundles_post_ra>
